<compile_context>
chip_gen: v7x
topology: tpu7x:2x2x1
jax: 0.10.0
libtpu: 0.0.40
codegen_flags: <defaults>
</compile_context>

<pallas_src>
import jax
import jax.numpy as jnp
from jax.experimental import pallas as pl
from jax.experimental.pallas import tpu as pltpu


# ---------------------------------------------------------------------------
# Fused kernel: per-graph GIB on grid=(G,), classifier epilogue on last step
# ---------------------------------------------------------------------------
def fused_kernel(adj_ref, x_ref, labels_ref,
                 w_g1_ref, b_g1_ref, w_g2_ref, b_g2_ref,
                 w_f1_ref, b_f1_ref, w_f2_ref, b_f2_ref,
                 w_c1_ref, b_c1_ref, w_c2_ref, b_c2_ref,
                 out_ref, cls_ref, pen_ref,
                 data_scratch, pen_acc):
    f32 = jnp.float32
    g = pl.program_id(0)
    num_graphs = data_scratch.shape[0] // 2      # static

    adj = adj_ref[0]                             # (N, N) raw dense adjacency
    x = x_ref[0]                                 # (N, F)
    n = adj.shape[0]

    @pl.when(g == 0)
    def _():
        pen_acc[0] = 0.0
        cls_ref[0, 0] = 0.0
        pen_ref[0, 0] = 0.0

    # --- GCN normalization folded in:  A_norm @ Y == d * (A_hat @ (d * Y))
    #     with A_hat = A + I, d = rsqrt(rowsum(A_hat)) as a column vector.
    eye_n = (jax.lax.broadcasted_iota(jnp.int32, (n, n), 0)
             == jax.lax.broadcasted_iota(jnp.int32, (n, n), 1)).astype(f32)
    a_hat = adj + eye_n
    deg = jnp.sum(a_hat, axis=1, keepdims=True)                  # (N, 1)
    d = jax.lax.rsqrt(deg)                                       # EUP, >=1 deg

    # GCN layer 1 + ReLU
    xw1 = jnp.dot(x, w_g1_ref[...], preferred_element_type=f32)
    h1 = d * jnp.dot(a_hat, d * xw1, preferred_element_type=f32) + b_g1_ref[...]
    h1 = jnp.maximum(h1, 0.0)

    # GCN layer 2 (no activation)
    hw2 = jnp.dot(h1, w_g2_ref[...], preferred_element_type=f32)
    h2 = d * jnp.dot(a_hat, d * hw2, preferred_element_type=f32) + b_g2_ref[...]

    # fully_connected_1 + tanh
    af1 = jnp.tanh(jnp.dot(h2, w_f1_ref[...], preferred_element_type=f32)
                   + b_f1_ref[...])

    # fully_connected_2 + softmax over dim=1  -> assignment (N, 2)
    logits = jnp.dot(af1, w_f2_ref[...], preferred_element_type=f32) + b_f2_ref[...]
    m = jnp.max(logits, axis=1, keepdims=True)
    e = jnp.exp(logits - m)
    assignment = e / jnp.sum(e, axis=1, keepdims=True)

    # group_features = assignment^T @ h2  -> (2, D2)
    group = jax.lax.dot_general(assignment, h2, (((0,), (0,)), ((), ())),
                                preferred_element_type=f32)

    # new_adj = assignment^T @ Adj @ assignment -> (2, 2), L1-row-normalized
    tmp = jax.lax.dot_general(assignment, adj, (((0,), (0,)), ((), ())),
                              preferred_element_type=f32)          # (2, N)
    new_adj = jnp.dot(tmp, assignment, preferred_element_type=f32)  # (2, 2)
    row_l1 = jnp.sum(jnp.abs(new_adj), axis=1, keepdims=True)
    norm_adj = new_adj / jnp.maximum(row_l1, 1e-12)

    eye2 = (jax.lax.broadcasted_iota(jnp.int32, (2, 2), 0)
            == jax.lax.broadcasted_iota(jnp.int32, (2, 2), 1)).astype(f32)
    diag = jnp.sum(norm_adj * eye2, axis=1, keepdims=True)          # (2, 1)
    pen_acc[0] += jnp.mean((diag - 1.0) ** 2)                       # MSE vs ones(2)

    positive = jnp.clip(group[0:1, :], -100.0, 100.0)
    negative = jnp.clip(group[1:2, :], -100.0, 100.0)
    emb = jnp.mean(group, axis=0, keepdims=True)

    # Packed per-graph output block: (1, 3, D2) = [embedding; positive; negative]
    out_ref[0] = jnp.concatenate([emb, positive, negative], axis=0)

    # Stash rows for the fused classifier epilogue: rows [0:G]=emb, [G:2G]=pos
    data_scratch[pl.ds(g, 1), :] = emb
    data_scratch[pl.ds(num_graphs + g, 1), :] = positive

    # Classifier + MSE on the final grid step (supervise_classify_loss)
    @pl.when(g == num_graphs - 1)
    def _():
        data = data_scratch[...]                                    # (2G, D2)
        labels = labels_ref[...]                                    # (G, 1)
        h = jnp.maximum(jnp.dot(data, w_c1_ref[...], preferred_element_type=f32)
                        + b_c1_ref[...], 0.0)
        pred = jnp.maximum(jnp.dot(h, w_c2_ref[...], preferred_element_type=f32)
                           + b_c2_ref[...], 0.0)                    # (2G, 1)
        err_e = pred[0:num_graphs, :] - labels
        err_p = pred[num_graphs:2 * num_graphs, :] - labels
        # mean over 2G rows == 0.5 * (mean over first G + mean over last G)
        cls_ref[0, 0] = 0.5 * (jnp.mean(err_e ** 2) + jnp.mean(err_p ** 2))
        pen_ref[0, 0] = pen_acc[0] * (1.0 / num_graphs)


# ---------------------------------------------------------------------------
# Wrapper: single fused pallas_call over all graphs, everything under jit
# ---------------------------------------------------------------------------
def _fused_call(adj, x, labels, params):
    G, N, _ = adj.shape
    F = x.shape[2]
    D1 = params["w_g1"].shape[1]
    D2 = params["w_g2"].shape[1]
    DN1 = params["w_f1"].shape[1]
    DN2 = params["w_f2"].shape[1]
    H = params["w_c1"].shape[1]

    const2 = lambda g: (0, 0)
    smem = pltpu.MemorySpace.SMEM

    in_specs = [
        pl.BlockSpec((1, N, N), lambda g: (g, 0, 0)),   # adj   (per-graph tile)
        pl.BlockSpec((1, N, F), lambda g: (g, 0, 0)),   # x     (per-graph tile)
        pl.BlockSpec((G, 1), const2),                   # labels (resident)
        pl.BlockSpec((F, D1), const2),  pl.BlockSpec((1, D1), const2),   # GCN1
        pl.BlockSpec((D1, D2), const2), pl.BlockSpec((1, D2), const2),   # GCN2
        pl.BlockSpec((D2, DN1), const2), pl.BlockSpec((1, DN1), const2), # fc1
        pl.BlockSpec((DN1, DN2), const2), pl.BlockSpec((1, DN2), const2),# fc2
        pl.BlockSpec((D2, H), const2),  pl.BlockSpec((1, H), const2),    # cls[0]
        pl.BlockSpec((H, 1), const2),   pl.BlockSpec((1, 1), const2),    # cls[2]
    ]
    out_specs = (
        pl.BlockSpec((1, 3, D2), lambda g: (g, 0, 0)),                   # packed
        pl.BlockSpec((1, 1), const2, memory_space=smem),                 # cls_loss
        pl.BlockSpec((1, 1), const2, memory_space=smem),                 # pen mean
    )
    out_shape = (
        jax.ShapeDtypeStruct((G, 3, D2), jnp.float32),
        jax.ShapeDtypeStruct((1, 1), jnp.float32),
        jax.ShapeDtypeStruct((1, 1), jnp.float32),
    )
    scratch_shapes = [
        pltpu.VMEM((2 * G, D2), jnp.float32),   # emb/pos rows for classifier
        pltpu.SMEM((1,), jnp.float32),          # pos_penalty accumulator
    ]

    return pl.pallas_call(
        fused_kernel,
        out_shape=out_shape,
        grid_spec=pltpu.PrefetchScalarGridSpec(
            num_scalar_prefetch=0,
            grid=(G,),
            in_specs=in_specs,
            out_specs=out_specs,
            scratch_shapes=scratch_shapes,
        ),
        compiler_params=pltpu.CompilerParams(
            # graph axis carries scratch accumulation -> sequential ("arbitrary")
            dimension_semantics=("arbitrary",),
            vmem_limit_bytes=32 * 1024 * 1024,
        ),
    )(adj, x, labels,
      params["w_g1"], params["b_g1"], params["w_g2"], params["b_g2"],
      params["w_f1"], params["b_f1"], params["w_f2"], params["b_f2"],
      params["w_c1"], params["b_c1"], params["w_c2"], params["b_c2"])


def _build_adjacency(edge_index, n):
    # to_dense_adj(edges)[0]: scatter-ADD so duplicate edges accumulate
    a = jnp.zeros((n, n), jnp.float32)
    return a.at[edge_index[0], edge_index[1]].add(1.0)


@jax.jit
def subgraph_forward_batched(features, edge_index, labels, params, con_weight):
    G, N, _ = features.shape
    adj = jax.vmap(lambda e: _build_adjacency(e, N))(edge_index)   # (G, N, N)
    packed, cls_loss, pen_mean = _fused_call(adj, features, labels, params)
    embeddings = packed[:, 0, :]
    positives = packed[:, 1, :]
    negatives = packed[:, 2, :]
    return (embeddings, positives, negatives,
            cls_loss[0, 0], con_weight * pen_mean[0, 0])


def subgraph_forward(graphs, params, con_weight):
    # Batched fused path: all graphs must share node/edge counts.
    # TODO(synk): pad variable-size graphs (node masks + masked degrees) to
    # support heterogeneous N/E like the original per-graph Python loop.
    features = jnp.stack([g["features"] for g in graphs]).astype(jnp.float32)
    edges = jnp.stack([g["edges"] for g in graphs])
    labels = jnp.asarray([g["label"] for g in graphs],
                         jnp.float32).reshape(-1, 1)
    return subgraph_forward_batched(features, edges, labels, params,
                                    jnp.float32(con_weight))


# ---------------------------------------------------------------------------
# Deterministic parameter init (synthetic; shapes from module __init__)
# ---------------------------------------------------------------------------
def init_params(key, f, d1, d2, dn1, dn2, h):
    ks = jax.random.split(key, 12)

    def w(k, shape):
        return (0.1 * jax.random.normal(k, shape)).astype(jnp.float32)

    return {
        "w_g1": w(ks[0], (f, d1)),    "b_g1": w(ks[1], (1, d1)),     # GCNConv 1
        "w_g2": w(ks[2], (d1, d2)),   "b_g2": w(ks[3], (1, d2)),     # GCNConv 2
        "w_f1": w(ks[4], (d2, dn1)),  "b_f1": w(ks[5], (1, dn1)),    # fc1
        "w_f2": w(ks[6], (dn1, dn2)), "b_f2": w(ks[7], (1, dn2)),    # fc2 (2 grp)
        "w_c1": w(ks[8], (d2, h)),    "b_c1": w(ks[9], (1, h)),      # classify[0]
        "w_c2": w(ks[10], (h, 1)),    "b_c2": w(ks[11], (1, 1)),     # classify[2]
    }


if __name__ == "__main__":
    key = jax.random.PRNGKey(0)
    # args: first_gcn=16, second_gcn=16, first_dense=8, second_dense=2,
    #       cls_hidden=16, con_weight=5.0
    F, D1, D2, DN1, DN2, H = 4, 16, 16, 8, 2, 16
    N, G = 8, 2
    con_weight = 5.0

    k_params, k_feat = jax.random.split(key)
    params = init_params(k_params, F, D1, D2, DN1, DN2, H)

    # simple undirected ring graph (edge_index shape (2, 2N))
    src = jnp.arange(N, dtype=jnp.int32)
    dst = (src + 1) % N
    edges = jnp.stack([jnp.concatenate([src, dst]), jnp.concatenate([dst, src])])

    feat_keys = jax.random.split(k_feat, G)
    graphs = []
    for gi in range(G):
        graphs.append({
            "features": jax.random.normal(feat_keys[gi], (N, F), jnp.float32),
            "edges": edges,
            "label": float(gi % 2),
        })

    outs = subgraph_forward(graphs, params, con_weight)
    outs = jax.block_until_ready(outs)
    print("KERNEL_OK")
</pallas_src>

<mosaic_0001>
module attributes {stable_mosaic.version = 11 : i64} {
  func.func private @main(%arg0: i32) attributes {dimension_semantics = [#tpu.dimension_semantics<core_parallel>], iteration_bounds = array<i64: 2>, tpu.core_type = #tpu.core_type<sc_scalar_subcore>, window_params = []} {
    return
  }
}

module attributes {stable_mosaic.version = 11 : i64} {
  func.func private @main(%arg0: i32) attributes {dimension_semantics = [#tpu.dimension_semantics<core_parallel>], iteration_bounds = array<i64: 2>, tpu.core_type = #tpu.core_type<sc_scalar_subcore>, window_params = []} {
    return
  }
}

module attributes {stable_mosaic.version = 11 : i64} {
  func.func @fused_kernel(%arg0: i32, %arg1: memref<1x8x8xf32, #tpu.memory_space<vmem>>, %arg2: memref<1x8x4xf32, #tpu.memory_space<vmem>>, %arg3: memref<2x1xf32, #tpu.memory_space<vmem>>, %arg4: memref<4x16xf32, #tpu.memory_space<vmem>>, %arg5: memref<1x16xf32, #tpu.memory_space<vmem>>, %arg6: memref<16x16xf32, #tpu.memory_space<vmem>>, %arg7: memref<1x16xf32, #tpu.memory_space<vmem>>, %arg8: memref<16x8xf32, #tpu.memory_space<vmem>>, %arg9: memref<1x8xf32, #tpu.memory_space<vmem>>, %arg10: memref<8x2xf32, #tpu.memory_space<vmem>>, %arg11: memref<1x2xf32, #tpu.memory_space<vmem>>, %arg12: memref<16x16xf32, #tpu.memory_space<vmem>>, %arg13: memref<1x16xf32, #tpu.memory_space<vmem>>, %arg14: memref<16x1xf32, #tpu.memory_space<vmem>>, %arg15: memref<1x1xf32, #tpu.memory_space<vmem>>, %arg16: memref<1x3x16xf32, #tpu.memory_space<vmem>>, %arg17: memref<1x1xf32, #tpu.memory_space<smem>>, %arg18: memref<1x1xf32, #tpu.memory_space<smem>>, %arg19: memref<4x16xf32, #tpu.memory_space<vmem>>, %arg20: memref<1xf32, #tpu.memory_space<smem>>) attributes {dimension_semantics = [#tpu.dimension_semantics<arbitrary>], iteration_bounds = array<i64: 2>, scalar_prefetch = 0 : i64, scratch_operands = 2 : i64, tpu.core_type = #tpu.core_type<tc>, window_params = [{transform_indices = @transform_0, window_bounds = array<i64: 1, 8, 8>}, {transform_indices = @transform_1, window_bounds = array<i64: 1, 8, 4>}, {pipeline_mode = #tpu.pipeline_mode<synchronous>, transform_indices = @transform_2, window_bounds = array<i64: 2, 1>}, {pipeline_mode = #tpu.pipeline_mode<synchronous>, transform_indices = @transform_3, window_bounds = array<i64: 4, 16>}, {pipeline_mode = #tpu.pipeline_mode<synchronous>, transform_indices = @transform_4, window_bounds = array<i64: 1, 16>}, {pipeline_mode = #tpu.pipeline_mode<synchronous>, transform_indices = @transform_5, window_bounds = array<i64: 16, 16>}, {pipeline_mode = #tpu.pipeline_mode<synchronous>, transform_indices = @transform_6, window_bounds = array<i64: 1, 16>}, {pipeline_mode = #tpu.pipeline_mode<synchronous>, transform_indices = @transform_7, window_bounds = array<i64: 16, 8>}, {pipeline_mode = #tpu.pipeline_mode<synchronous>, transform_indices = @transform_8, window_bounds = array<i64: 1, 8>}, {pipeline_mode = #tpu.pipeline_mode<synchronous>, transform_indices = @transform_9, window_bounds = array<i64: 8, 2>}, {pipeline_mode = #tpu.pipeline_mode<synchronous>, transform_indices = @transform_10, window_bounds = array<i64: 1, 2>}, {pipeline_mode = #tpu.pipeline_mode<synchronous>, transform_indices = @transform_11, window_bounds = array<i64: 16, 16>}, {pipeline_mode = #tpu.pipeline_mode<synchronous>, transform_indices = @transform_12, window_bounds = array<i64: 1, 16>}, {pipeline_mode = #tpu.pipeline_mode<synchronous>, transform_indices = @transform_13, window_bounds = array<i64: 16, 1>}, {pipeline_mode = #tpu.pipeline_mode<synchronous>, transform_indices = @transform_14, window_bounds = array<i64: 1, 1>}, {transform_indices = @transform_15, window_bounds = array<i64: 1, 3, 16>}, {transform_indices = @transform_16, window_bounds = array<i64: 1, 1>}, {transform_indices = @transform_17, window_bounds = array<i64: 1, 1>}]} {
    %c0 = arith.constant 0 : index
    %c0_0 = arith.constant 0 : index
    %c0_1 = arith.constant 0 : index
    %0 = vector.load %arg1[%c0, %c0_0, %c0_1] : memref<1x8x8xf32, #tpu.memory_space<vmem>>, vector<1x8x8xf32>
    %1 = vector.shape_cast %0 : vector<1x8x8xf32> to vector<8x8xf32>
    %c0_2 = arith.constant 0 : index
    %c0_3 = arith.constant 0 : index
    %c0_4 = arith.constant 0 : index
    %2 = vector.load %arg2[%c0_2, %c0_3, %c0_4] : memref<1x8x4xf32, #tpu.memory_space<vmem>>, vector<1x8x4xf32>
    %3 = vector.shape_cast %2 : vector<1x8x4xf32> to vector<8x4xf32>
    %c0_i32 = arith.constant 0 : i32
    %4 = arith.cmpi eq, %arg0, %c0_i32 : i32
    %5 = arith.extui %4 : i1 to i32
    %c0_i32_5 = arith.constant 0 : i32
    %6 = arith.cmpi ne, %5, %c0_i32_5 : i32
    scf.if %6 {
      %cst_54 = arith.constant 0.000000e+00 : f32
      %c0_55 = arith.constant 0 : index
      %113 = memref.load %arg20[%c0_55] : memref<1xf32, #tpu.memory_space<smem>>
      memref.store %cst_54, %arg20[%c0_55] : memref<1xf32, #tpu.memory_space<smem>>
      %cst_56 = arith.constant 0.000000e+00 : f32
      %c0_57 = arith.constant 0 : index
      %c0_58 = arith.constant 0 : index
      %114 = memref.load %arg17[%c0_57, %c0_58] : memref<1x1xf32, #tpu.memory_space<smem>>
      memref.store %cst_56, %arg17[%c0_57, %c0_58] : memref<1x1xf32, #tpu.memory_space<smem>>
      %cst_59 = arith.constant 0.000000e+00 : f32
      %c0_60 = arith.constant 0 : index
      %c0_61 = arith.constant 0 : index
      %115 = memref.load %arg18[%c0_60, %c0_61] : memref<1x1xf32, #tpu.memory_space<smem>>
      memref.store %cst_59, %arg18[%c0_60, %c0_61] : memref<1x1xf32, #tpu.memory_space<smem>>
    } else {
    }
    %7 = tpu.iota {dimensions = array<i32: 0>} : vector<8x8xi32>
    %8 = tpu.iota {dimensions = array<i32: 1>} : vector<8x8xi32>
    %9 = arith.cmpi eq, %7, %8 : vector<8x8xi32>
    %10 = arith.extui %9 : vector<8x8xi1> to vector<8x8xi32>
    %11 = arith.sitofp %10 : vector<8x8xi32> to vector<8x8xf32>
    %12 = arith.addf %1, %11 : vector<8x8xf32>
    %cst = arith.constant dense<0.000000e+00> : vector<8xf32>
    %13 = vector.multi_reduction <add>, %12, %cst [1] : vector<8x8xf32> to vector<8xf32>
    %14 = vector.shape_cast %13 : vector<8xf32> to vector<8x1xf32>
    %15 = math.rsqrt %14 : vector<8x1xf32>
    %c0_6 = arith.constant 0 : index
    %c0_7 = arith.constant 0 : index
    %16 = vector.load %arg4[%c0_6, %c0_7] : memref<4x16xf32, #tpu.memory_space<vmem>>, vector<4x16xf32>
    %cst_8 = arith.constant dense<0.000000e+00> : vector<8x16xf32>
    %17 = tpu.matmul %3, %16, %cst_8 {dimension_numbers = #tpu.dot_dimension_numbers<[1], [0], [0], [1], [0, 0, 1, 1], [], []>} : vector<8x4xf32>, vector<4x16xf32>, vector<8x16xf32> -> vector<8x16xf32>
    %18 = vector.broadcast %15 : vector<8x1xf32> to vector<8x16xf32>
    %19 = arith.mulf %18, %17 : vector<8x16xf32>
    %cst_9 = arith.constant dense<0.000000e+00> : vector<8x16xf32>
    %20 = tpu.matmul %12, %19, %cst_9 {dimension_numbers = #tpu.dot_dimension_numbers<[1], [0], [0], [1], [0, 0, 1, 1], [], []>} : vector<8x8xf32>, vector<8x16xf32>, vector<8x16xf32> -> vector<8x16xf32>
    %21 = vector.broadcast %15 : vector<8x1xf32> to vector<8x16xf32>
    %22 = arith.mulf %21, %20 : vector<8x16xf32>
    %c0_10 = arith.constant 0 : index
    %c0_11 = arith.constant 0 : index
    %23 = vector.load %arg5[%c0_10, %c0_11] : memref<1x16xf32, #tpu.memory_space<vmem>>, vector<1x16xf32>
    %24 = vector.broadcast %23 : vector<1x16xf32> to vector<8x16xf32>
    %25 = arith.addf %22, %24 : vector<8x16xf32>
    %cst_12 = arith.constant 0.000000e+00 : f32
    %26 = vector.broadcast %cst_12 : f32 to vector<8x16xf32>
    %27 = arith.maximumf %25, %26 : vector<8x16xf32>
    %c0_13 = arith.constant 0 : index
    %c0_14 = arith.constant 0 : index
    %28 = vector.load %arg6[%c0_13, %c0_14] : memref<16x16xf32, #tpu.memory_space<vmem>>, vector<16x16xf32>
    %cst_15 = arith.constant dense<0.000000e+00> : vector<8x16xf32>
    %29 = tpu.matmul %27, %28, %cst_15 {dimension_numbers = #tpu.dot_dimension_numbers<[1], [0], [0], [1], [0, 0, 1, 1], [], []>} : vector<8x16xf32>, vector<16x16xf32>, vector<8x16xf32> -> vector<8x16xf32>
    %30 = vector.broadcast %15 : vector<8x1xf32> to vector<8x16xf32>
    %31 = arith.mulf %30, %29 : vector<8x16xf32>
    %cst_16 = arith.constant dense<0.000000e+00> : vector<8x16xf32>
    %32 = tpu.matmul %12, %31, %cst_16 {dimension_numbers = #tpu.dot_dimension_numbers<[1], [0], [0], [1], [0, 0, 1, 1], [], []>} : vector<8x8xf32>, vector<8x16xf32>, vector<8x16xf32> -> vector<8x16xf32>
    %33 = vector.broadcast %15 : vector<8x1xf32> to vector<8x16xf32>
    %34 = arith.mulf %33, %32 : vector<8x16xf32>
    %c0_17 = arith.constant 0 : index
    %c0_18 = arith.constant 0 : index
    %35 = vector.load %arg7[%c0_17, %c0_18] : memref<1x16xf32, #tpu.memory_space<vmem>>, vector<1x16xf32>
    %36 = vector.broadcast %35 : vector<1x16xf32> to vector<8x16xf32>
    %37 = arith.addf %34, %36 : vector<8x16xf32>
    %c0_19 = arith.constant 0 : index
    %c0_20 = arith.constant 0 : index
    %38 = vector.load %arg8[%c0_19, %c0_20] : memref<16x8xf32, #tpu.memory_space<vmem>>, vector<16x8xf32>
    %cst_21 = arith.constant dense<0.000000e+00> : vector<8x8xf32>
    %39 = tpu.matmul %37, %38, %cst_21 {dimension_numbers = #tpu.dot_dimension_numbers<[1], [0], [0], [1], [0, 0, 1, 1], [], []>} : vector<8x16xf32>, vector<16x8xf32>, vector<8x8xf32> -> vector<8x8xf32>
    %c0_22 = arith.constant 0 : index
    %c0_23 = arith.constant 0 : index
    %40 = vector.load %arg9[%c0_22, %c0_23] : memref<1x8xf32, #tpu.memory_space<vmem>>, vector<1x8xf32>
    %41 = vector.broadcast %40 : vector<1x8xf32> to vector<8x8xf32>
    %42 = arith.addf %39, %41 : vector<8x8xf32>
    %43 = math.tanh %42 : vector<8x8xf32>
    %c0_24 = arith.constant 0 : index
    %c0_25 = arith.constant 0 : index
    %44 = vector.load %arg10[%c0_24, %c0_25] : memref<8x2xf32, #tpu.memory_space<vmem>>, vector<8x2xf32>
    %cst_26 = arith.constant dense<0.000000e+00> : vector<8x2xf32>
    %45 = tpu.matmul %43, %44, %cst_26 {dimension_numbers = #tpu.dot_dimension_numbers<[1], [0], [0], [1], [0, 0, 1, 1], [], []>} : vector<8x8xf32>, vector<8x2xf32>, vector<8x2xf32> -> vector<8x2xf32>
    %c0_27 = arith.constant 0 : index
    %c0_28 = arith.constant 0 : index
    %46 = vector.load %arg11[%c0_27, %c0_28] : memref<1x2xf32, #tpu.memory_space<vmem>>, vector<1x2xf32>
    %47 = vector.broadcast %46 : vector<1x2xf32> to vector<8x2xf32>
    %48 = arith.addf %45, %47 : vector<8x2xf32>
    %cst_29 = arith.constant dense<0xFF800000> : vector<8xf32>
    %49 = vector.multi_reduction <maximumf>, %48, %cst_29 [1] : vector<8x2xf32> to vector<8xf32>
    %50 = vector.shape_cast %49 : vector<8xf32> to vector<8x1xf32>
    %51 = vector.broadcast %50 : vector<8x1xf32> to vector<8x2xf32>
    %52 = arith.subf %48, %51 : vector<8x2xf32>
    %53 = math.exp %52 : vector<8x2xf32>
    %cst_30 = arith.constant dense<0.000000e+00> : vector<8xf32>
    %54 = vector.multi_reduction <add>, %53, %cst_30 [1] : vector<8x2xf32> to vector<8xf32>
    %55 = vector.shape_cast %54 : vector<8xf32> to vector<8x1xf32>
    %56 = vector.broadcast %55 : vector<8x1xf32> to vector<8x2xf32>
    %57 = arith.divf %53, %56 : vector<8x2xf32>
    %cst_31 = arith.constant dense<0.000000e+00> : vector<2x16xf32>
    %58 = tpu.matmul %57, %37, %cst_31 {dimension_numbers = #tpu.dot_dimension_numbers<[0], [0], [1], [1], [0, 1, 1, 1], [], []>} : vector<8x2xf32>, vector<8x16xf32>, vector<2x16xf32> -> vector<2x16xf32>
    %cst_32 = arith.constant dense<0.000000e+00> : vector<2x8xf32>
    %59 = tpu.matmul %57, %1, %cst_32 {dimension_numbers = #tpu.dot_dimension_numbers<[0], [0], [1], [1], [0, 1, 1, 1], [], []>} : vector<8x2xf32>, vector<8x8xf32>, vector<2x8xf32> -> vector<2x8xf32>
    %cst_33 = arith.constant dense<0.000000e+00> : vector<2x2xf32>
    %60 = tpu.matmul %59, %57, %cst_33 {dimension_numbers = #tpu.dot_dimension_numbers<[1], [0], [0], [1], [0, 0, 1, 1], [], []>} : vector<2x8xf32>, vector<8x2xf32>, vector<2x2xf32> -> vector<2x2xf32>
    %61 = math.absf %60 : vector<2x2xf32>
    %cst_34 = arith.constant dense<0.000000e+00> : vector<2xf32>
    %62 = vector.multi_reduction <add>, %61, %cst_34 [1] : vector<2x2xf32> to vector<2xf32>
    %63 = vector.shape_cast %62 : vector<2xf32> to vector<2x1xf32>
    %cst_35 = arith.constant 9.99999996E-13 : f32
    %64 = vector.broadcast %cst_35 : f32 to vector<2x1xf32>
    %65 = arith.maximumf %63, %64 : vector<2x1xf32>
    %66 = vector.broadcast %65 : vector<2x1xf32> to vector<2x2xf32>
    %67 = arith.divf %60, %66 : vector<2x2xf32>
    %68 = tpu.iota {dimensions = array<i32: 0>} : vector<2x2xi32>
    %69 = tpu.iota {dimensions = array<i32: 1>} : vector<2x2xi32>
    %70 = arith.cmpi eq, %68, %69 : vector<2x2xi32>
    %71 = arith.extui %70 : vector<2x2xi1> to vector<2x2xi32>
    %72 = arith.sitofp %71 : vector<2x2xi32> to vector<2x2xf32>
    %73 = arith.mulf %67, %72 : vector<2x2xf32>
    %cst_36 = arith.constant dense<0.000000e+00> : vector<2xf32>
    %74 = vector.multi_reduction <add>, %73, %cst_36 [1] : vector<2x2xf32> to vector<2xf32>
    %75 = vector.shape_cast %74 : vector<2xf32> to vector<2x1xf32>
    %c0_37 = arith.constant 0 : index
    %76 = memref.load %arg20[%c0_37] : memref<1xf32, #tpu.memory_space<smem>>
    %cst_38 = arith.constant 1.000000e+00 : f32
    %77 = vector.broadcast %cst_38 : f32 to vector<2x1xf32>
    %78 = arith.subf %75, %77 : vector<2x1xf32>
    %79 = arith.mulf %78, %78 : vector<2x1xf32>
    %80 = vector.shape_cast %79 : vector<2x1xf32> to vector<1x2x1xf32>
    %cst_39 = arith.constant dense<0.000000e+00> : vector<1xf32>
    %81 = vector.multi_reduction <add>, %80, %cst_39 [1, 2] : vector<1x2x1xf32> to vector<1xf32>
    %82 = vector.shape_cast %81 : vector<1xf32> to vector<1x1x1xf32>
    %83 = vector.extract %82[0, 0, 0] : f32 from vector<1x1x1xf32>
    %cst_40 = arith.constant 2.000000e+00 : f32
    %84 = arith.divf %83, %cst_40 : f32
    %85 = arith.addf %76, %84 : f32
    %c0_41 = arith.constant 0 : index
    %86 = memref.load %arg20[%c0_41] : memref<1xf32, #tpu.memory_space<smem>>
    memref.store %85, %arg20[%c0_41] : memref<1xf32, #tpu.memory_space<smem>>
    %87 = vector.extract_strided_slice %58 {offsets = [0, 0], sizes = [1, 16], strides = [1, 1]} : vector<2x16xf32> to vector<1x16xf32>
    %cst_42 = arith.constant -1.000000e+02 : f32
    %cst_43 = arith.constant 1.000000e+02 : f32
    %88 = vector.broadcast %cst_42 : f32 to vector<1x16xf32>
    %89 = arith.maximumf %88, %87 : vector<1x16xf32>
    %90 = vector.broadcast %cst_43 : f32 to vector<1x16xf32>
    %91 = arith.minimumf %90, %89 : vector<1x16xf32>
    %92 = vector.extract_strided_slice %58 {offsets = [1, 0], sizes = [1, 16], strides = [1, 1]} : vector<2x16xf32> to vector<1x16xf32>
    %cst_44 = arith.constant -1.000000e+02 : f32
    %cst_45 = arith.constant 1.000000e+02 : f32
    %93 = vector.broadcast %cst_44 : f32 to vector<1x16xf32>
    %94 = arith.maximumf %93, %92 : vector<1x16xf32>
    %95 = vector.broadcast %cst_45 : f32 to vector<1x16xf32>
    %96 = arith.minimumf %95, %94 : vector<1x16xf32>
    %cst_46 = arith.constant dense<0.000000e+00> : vector<16xf32>
    %97 = vector.multi_reduction <add>, %58, %cst_46 [0] : vector<2x16xf32> to vector<16xf32>
    %98 = vector.shape_cast %97 : vector<16xf32> to vector<1x16xf32>
    %cst_47 = arith.constant 2.000000e+00 : f32
    %99 = vector.broadcast %cst_47 : f32 to vector<1x16xf32>
    %100 = arith.divf %98, %99 : vector<1x16xf32>
    %101 = tpu.concatenate %100, %91, %96 in 0 : vector<1x16xf32>, vector<1x16xf32>, vector<1x16xf32> -> vector<3x16xf32>
    %c0_48 = arith.constant 0 : index
    %c0_49 = arith.constant 0 : index
    %c0_50 = arith.constant 0 : index
    %102 = vector.load %arg16[%c0_48, %c0_49, %c0_50] : memref<1x3x16xf32, #tpu.memory_space<vmem>>, vector<1x3x16xf32>
    %103 = vector.shape_cast %102 : vector<1x3x16xf32> to vector<3x16xf32>
    %104 = vector.shape_cast %101 : vector<3x16xf32> to vector<1x3x16xf32>
    tpu.vector_store %arg16[%c0_48, %c0_49, %c0_50], %104 {strides = array<i32>} : memref<1x3x16xf32, #tpu.memory_space<vmem>>, vector<1x3x16xf32>,
    %105 = arith.index_cast %arg0 : i32 to index
    %c0_51 = arith.constant 0 : index
    %106 = vector.load %arg19[%105, %c0_51] : memref<4x16xf32, #tpu.memory_space<vmem>>, vector<1x16xf32>
    tpu.vector_store %arg19[%105, %c0_51], %100 {strides = array<i32>} : memref<4x16xf32, #tpu.memory_space<vmem>>, vector<1x16xf32>,
    %c2_i32 = arith.constant 2 : i32
    %107 = arith.addi %c2_i32, %arg0 : i32
    %108 = arith.index_cast %107 : i32 to index
    %c0_52 = arith.constant 0 : index
    %109 = vector.load %arg19[%108, %c0_52] : memref<4x16xf32, #tpu.memory_space<vmem>>, vector<1x16xf32>
    tpu.vector_store %arg19[%108, %c0_52], %91 {strides = array<i32>} : memref<4x16xf32, #tpu.memory_space<vmem>>, vector<1x16xf32>,
    %c1_i32 = arith.constant 1 : i32
    %110 = arith.cmpi eq, %arg0, %c1_i32 : i32
    %111 = arith.extui %110 : i1 to i32
    %c0_i32_53 = arith.constant 0 : i32
    %112 = arith.cmpi ne, %111, %c0_i32_53 : i32
    scf.if %112 {
      %c0_54 = arith.constant 0 : index
      %c0_55 = arith.constant 0 : index
      %113 = vector.load %arg19[%c0_54, %c0_55] : memref<4x16xf32, #tpu.memory_space<vmem>>, vector<4x16xf32>
      %c0_56 = arith.constant 0 : index
      %c0_57 = arith.constant 0 : index
      %114 = vector.load %arg3[%c0_56, %c0_57] : memref<2x1xf32, #tpu.memory_space<vmem>>, vector<2x1xf32>
      %c0_58 = arith.constant 0 : index
      %c0_59 = arith.constant 0 : index
      %115 = vector.load %arg12[%c0_58, %c0_59] : memref<16x16xf32, #tpu.memory_space<vmem>>, vector<16x16xf32>
      %cst_60 = arith.constant dense<0.000000e+00> : vector<4x16xf32>
      %116 = tpu.matmul %113, %115, %cst_60 {dimension_numbers = #tpu.dot_dimension_numbers<[1], [0], [0], [1], [0, 0, 1, 1], [], []>} : vector<4x16xf32>, vector<16x16xf32>, vector<4x16xf32> -> vector<4x16xf32>
      %c0_61 = arith.constant 0 : index
      %c0_62 = arith.constant 0 : index
      %117 = vector.load %arg13[%c0_61, %c0_62] : memref<1x16xf32, #tpu.memory_space<vmem>>, vector<1x16xf32>
      %118 = vector.broadcast %117 : vector<1x16xf32> to vector<4x16xf32>
      %119 = arith.addf %116, %118 : vector<4x16xf32>
      %cst_63 = arith.constant 0.000000e+00 : f32
      %120 = vector.broadcast %cst_63 : f32 to vector<4x16xf32>
      %121 = arith.maximumf %119, %120 : vector<4x16xf32>
      %c0_64 = arith.constant 0 : index
      %c0_65 = arith.constant 0 : index
      %122 = vector.load %arg14[%c0_64, %c0_65] : memref<16x1xf32, #tpu.memory_space<vmem>>, vector<16x1xf32>
      %cst_66 = arith.constant dense<0.000000e+00> : vector<4x1xf32>
      %123 = tpu.matmul %121, %122, %cst_66 {dimension_numbers = #tpu.dot_dimension_numbers<[1], [0], [0], [1], [0, 0, 1, 1], [], []>} : vector<4x16xf32>, vector<16x1xf32>, vector<4x1xf32> -> vector<4x1xf32>
      %c0_67 = arith.constant 0 : index
      %c0_68 = arith.constant 0 : index
      %124 = vector.load %arg15[%c0_67, %c0_68] : memref<1x1xf32, #tpu.memory_space<vmem>>, vector<1x1xf32>
      %125 = vector.broadcast %124 : vector<1x1xf32> to vector<4x1xf32>
      %126 = arith.addf %123, %125 : vector<4x1xf32>
      %cst_69 = arith.constant 0.000000e+00 : f32
      %127 = vector.broadcast %cst_69 : f32 to vector<4x1xf32>
      %128 = arith.maximumf %126, %127 : vector<4x1xf32>
      %129 = vector.extract_strided_slice %128 {offsets = [0, 0], sizes = [2, 1], strides = [1, 1]} : vector<4x1xf32> to vector<2x1xf32>
      %130 = arith.subf %129, %114 : vector<2x1xf32>
      %131 = vector.extract_strided_slice %128 {offsets = [2, 0], sizes = [2, 1], strides = [1, 1]} : vector<4x1xf32> to vector<2x1xf32>
      %132 = arith.subf %131, %114 : vector<2x1xf32>
      %133 = arith.mulf %130, %130 : vector<2x1xf32>
      %134 = vector.shape_cast %133 : vector<2x1xf32> to vector<1x2x1xf32>
      %cst_70 = arith.constant dense<0.000000e+00> : vector<1xf32>
      %135 = vector.multi_reduction <add>, %134, %cst_70 [1, 2] : vector<1x2x1xf32> to vector<1xf32>
      %136 = vector.shape_cast %135 : vector<1xf32> to vector<1x1x1xf32>
      %137 = vector.extract %136[0, 0, 0] : f32 from vector<1x1x1xf32>
      %cst_71 = arith.constant 2.000000e+00 : f32
      %138 = arith.divf %137, %cst_71 : f32
      %139 = arith.mulf %132, %132 : vector<2x1xf32>
      %140 = vector.shape_cast %139 : vector<2x1xf32> to vector<1x2x1xf32>
      %cst_72 = arith.constant dense<0.000000e+00> : vector<1xf32>
      %141 = vector.multi_reduction <add>, %140, %cst_72 [1, 2] : vector<1x2x1xf32> to vector<1xf32>
      %142 = vector.shape_cast %141 : vector<1xf32> to vector<1x1x1xf32>
      %143 = vector.extract %142[0, 0, 0] : f32 from vector<1x1x1xf32>
      %cst_73 = arith.constant 2.000000e+00 : f32
      %144 = arith.divf %143, %cst_73 : f32
      %145 = arith.addf %138, %144 : f32
      %cst_74 = arith.constant 5.000000e-01 : f32
      %146 = arith.mulf %cst_74, %145 : f32
      %c0_75 = arith.constant 0 : index
      %c0_76 = arith.constant 0 : index
      %147 = memref.load %arg17[%c0_75, %c0_76] : memref<1x1xf32, #tpu.memory_space<smem>>
      memref.store %146, %arg17[%c0_75, %c0_76] : memref<1x1xf32, #tpu.memory_space<smem>>
      %c0_77 = arith.constant 0 : index
      %148 = memref.load %arg20[%c0_77] : memref<1xf32, #tpu.memory_space<smem>>
      %cst_78 = arith.constant 5.000000e-01 : f32
      %149 = arith.mulf %148, %cst_78 : f32
      %c0_79 = arith.constant 0 : index
      %c0_80 = arith.constant 0 : index
      %150 = memref.load %arg18[%c0_79, %c0_80] : memref<1x1xf32, #tpu.memory_space<smem>>
      memref.store %149, %arg18[%c0_79, %c0_80] : memref<1x1xf32, #tpu.memory_space<smem>>
    } else {
    }
    return
  }
  func.func @transform_0(%arg0: i32) -> (i32, i32, i32) {
    %c0_i32 = arith.constant 0 : i32
    %c0_i32_0 = arith.constant 0 : i32
    %c0_i32_1 = arith.constant 0 : i32
    return %arg0, %c0_i32, %c0_i32_0 : i32, i32, i32
  }
  func.func @transform_1(%arg0: i32) -> (i32, i32, i32) {
    %c0_i32 = arith.constant 0 : i32
    %c0_i32_0 = arith.constant 0 : i32
    %c0_i32_1 = arith.constant 0 : i32
    return %arg0, %c0_i32, %c0_i32_0 : i32, i32, i32
  }
  func.func @transform_2(%arg0: i32) -> (i32, i32) {
    %c0_i32 = arith.constant 0 : i32
    %c0_i32_0 = arith.constant 0 : i32
    %c0_i32_1 = arith.constant 0 : i32
    return %c0_i32, %c0_i32_0 : i32, i32
  }
  func.func @transform_3(%arg0: i32) -> (i32, i32) {
    %c0_i32 = arith.constant 0 : i32
    %c0_i32_0 = arith.constant 0 : i32
    %c0_i32_1 = arith.constant 0 : i32
    return %c0_i32, %c0_i32_0 : i32, i32
  }
  func.func @transform_4(%arg0: i32) -> (i32, i32) {
    %c0_i32 = arith.constant 0 : i32
    %c0_i32_0 = arith.constant 0 : i32
    %c0_i32_1 = arith.constant 0 : i32
    return %c0_i32, %c0_i32_0 : i32, i32
  }
  func.func @transform_5(%arg0: i32) -> (i32, i32) {
    %c0_i32 = arith.constant 0 : i32
    %c0_i32_0 = arith.constant 0 : i32
    %c0_i32_1 = arith.constant 0 : i32
    return %c0_i32, %c0_i32_0 : i32, i32
  }
  func.func @transform_6(%arg0: i32) -> (i32, i32) {
    %c0_i32 = arith.constant 0 : i32
    %c0_i32_0 = arith.constant 0 : i32
    %c0_i32_1 = arith.constant 0 : i32
    return %c0_i32, %c0_i32_0 : i32, i32
  }
  func.func @transform_7(%arg0: i32) -> (i32, i32) {
    %c0_i32 = arith.constant 0 : i32
    %c0_i32_0 = arith.constant 0 : i32
    %c0_i32_1 = arith.constant 0 : i32
    return %c0_i32, %c0_i32_0 : i32, i32
  }
  func.func @transform_8(%arg0: i32) -> (i32, i32) {
    %c0_i32 = arith.constant 0 : i32
    %c0_i32_0 = arith.constant 0 : i32
    %c0_i32_1 = arith.constant 0 : i32
    return %c0_i32, %c0_i32_0 : i32, i32
  }
  func.func @transform_9(%arg0: i32) -> (i32, i32) {
    %c0_i32 = arith.constant 0 : i32
    %c0_i32_0 = arith.constant 0 : i32
    %c0_i32_1 = arith.constant 0 : i32
    return %c0_i32, %c0_i32_0 : i32, i32
  }
  func.func @transform_10(%arg0: i32) -> (i32, i32) {
    %c0_i32 = arith.constant 0 : i32
    %c0_i32_0 = arith.constant 0 : i32
    %c0_i32_1 = arith.constant 0 : i32
    return %c0_i32, %c0_i32_0 : i32, i32
  }
  func.func @transform_11(%arg0: i32) -> (i32, i32) {
    %c0_i32 = arith.constant 0 : i32
    %c0_i32_0 = arith.constant 0 : i32
    %c0_i32_1 = arith.constant 0 : i32
    return %c0_i32, %c0_i32_0 : i32, i32
  }
  func.func @transform_12(%arg0: i32) -> (i32, i32) {
    %c0_i32 = arith.constant 0 : i32
    %c0_i32_0 = arith.constant 0 : i32
    %c0_i32_1 = arith.constant 0 : i32
    return %c0_i32, %c0_i32_0 : i32, i32
  }
  func.func @transform_13(%arg0: i32) -> (i32, i32) {
    %c0_i32 = arith.constant 0 : i32
    %c0_i32_0 = arith.constant 0 : i32
    %c0_i32_1 = arith.constant 0 : i32
    return %c0_i32, %c0_i32_0 : i32, i32
  }
  func.func @transform_14(%arg0: i32) -> (i32, i32) {
    %c0_i32 = arith.constant 0 : i32
    %c0_i32_0 = arith.constant 0 : i32
    %c0_i32_1 = arith.constant 0 : i32
    return %c0_i32, %c0_i32_0 : i32, i32
  }
  func.func @transform_15(%arg0: i32) -> (i32, i32, i32) {
    %c0_i32 = arith.constant 0 : i32
    %c0_i32_0 = arith.constant 0 : i32
    %c0_i32_1 = arith.constant 0 : i32
    return %arg0, %c0_i32, %c0_i32_0 : i32, i32, i32
  }
  func.func @transform_16(%arg0: i32) -> (i32, i32) {
    %c0_i32 = arith.constant 0 : i32
    %c0_i32_0 = arith.constant 0 : i32
    %c0_i32_1 = arith.constant 0 : i32
    return %c0_i32, %c0_i32_0 : i32, i32
  }
  func.func @transform_17(%arg0: i32) -> (i32, i32) {
    %c0_i32 = arith.constant 0 : i32
    %c0_i32_0 = arith.constant 0 : i32
    %c0_i32_1 = arith.constant 0 : i32
    return %c0_i32, %c0_i32_0 : i32, i32
  }
}

</mosaic_0001>

<bundles_post_ra>
// kernel: subgraph_forward_batched.1
= control target key start
LH: loop header
LB: loop body
LE: loop exit
PB: predicated region body
PF: predicated region fallthrough
CT: control target
= control target key end

     0   :  { %s2440_s0 = inlined_call_operand.hbm [shape: f32[2,8,8], index: 0, kind: input, shape index: {}]   ;;  %s2441_s1 = inlined_call_operand.vmem [shape: f32[2,8,4], index: 1, kind: input, shape index: {}]   ;;  %s2442_s2 = inlined_call_operand.vmem [shape: f32[2,1], index: 2, kind: input, shape index: {}]   ;;  %s2443_s3 = inlined_call_operand.vmem [shape: f32[4,16], index: 3, kind: input, shape index: {}]   ;;  %s2444_s4 = inlined_call_operand.vmem [shape: f32[1,16], index: 4, kind: input, shape index: {}]   ;;  %s2445_s5 = inlined_call_operand.vmem [shape: f32[16,16], index: 5, kind: input, shape index: {}]   ;;  %s2446_s6 = inlined_call_operand.vmem [shape: f32[1,16], index: 6, kind: input, shape index: {}]   ;;  %s2447_s7 = inlined_call_operand.vmem [shape: f32[16,8], index: 7, kind: input, shape index: {}]   ;;  %s2448_s8 = inlined_call_operand.vmem [shape: f32[1,8], index: 8, kind: input, shape index: {}]   ;;  %s2449_s9 = inlined_call_operand.vmem [shape: f32[8,2], index: 9, kind: input, shape index: {}]   ;;  %s2450_s10 = inlined_call_operand.vmem [shape: f32[1,2], index: 10, kind: input, shape index: {}]   ;;  %s2451_s11 = inlined_call_operand.vmem [shape: f32[16,16], index: 11, kind: input, shape index: {}]   ;;  %s2452_s12 = inlined_call_operand.vmem [shape: f32[1,16], index: 12, kind: input, shape index: {}]   ;;  %s2453_s13 = inlined_call_operand.vmem [shape: f32[16,1], index: 13, kind: input, shape index: {}]   ;;  %s2454_s14 = inlined_call_operand.<no memory space> [shape: f32[1,1], index: 14, kind: input, shape index: {}]   ;;  %s2455_s15 = inlined_call_operand.vmem [shape: f32[2,3,16], index: 15, kind: output, shape index: {0}]   ;;  %s2456_s16 = inlined_call_operand.hbm [shape: f32[1,1], index: 16, kind: output, shape index: {1}]   ;;  %s2457_s17 = inlined_call_operand.hbm [shape: f32[1,1], index: 17, kind: output, shape index: {2}]  }
   0x1   :  { %2463 = sst [smem:[#allocation17_spill]] %s2440_s0  ;;  %v23_v0 = vstv %s2454_s14 }
   0x2   :  { %2464 = sst [smem:[#allocation18_spill]] %s2441_s1  ;;  %24 = vst [vmem:[#allocation4] sm:$0x1] %v23_v0 }
   0x3   :  { %25 = vsyncpa [#allocation6], 0 }
   0x4   :  { %27 = vsyncpa [#allocation6 + $0x1], 0 }
   0x5   :  { %28 = vsyncpa [#allocation7], 0 }
   0x6   :  { %29 = vsyncpa [#allocation10], 0  ;;  %s2177_s26 = smov 0   ;;  %s2179_s27 = smov 0  }
   0x7   :  { %s2181_s28 = smov 0   ;;  %s2183_s29 = smov 0  }
   0x8 LB: > { %2465 = sst [smem:[#allocation14_spill]] %s2068_s28  ;;  %s2196_s14 = sadd.s32 4294967295, %s2072_s29   ;;  %s2072_s29 = sphi %s2183_s29, %s2477_s29   ;;  %s2068_s28 = sphi %s2181_s28, %s2479_s28   ;;  %s2064_s27 = sphi %s2179_s27, %s2481_s27   ;;  %s2060_s26 = sphi %s2177_s26, %s2480_s26  }
   0x9   : > { %s2199_s0 = sadd.s32 1, %s2072_s29   ;;  %s42_s18 = sadd.s32 1, %s2068_s28 }
   0xa   : > { %2466 = sst [smem:[#allocation15_spill]] %s2199_s0  ;;  %s39_s30 = ssub.s32 %s2072_s29, %s2199_s0 }
   0xb   : > { %p40_p0 = scmp.eq.s32.totalorder %s39_s30, 0  ;;  %p49_p1 = scmp.ne.s32.totalorder %s2068_s28, %s2064_s27 }
   0xc   : > { %p50_p2 = scmp.eq.s32.totalorder %s2072_s29, 0  ;;  %p55_p3 = scmp.ne.s32.totalorder %s2064_s27, %s2060_s26 }
   0xd   : > { %s2209_s19 = scalar_select %p40_p0, %s2068_s28, %s42_s18  }
   0xe   : > { %p51_p4 = por %p50_p2, %p49_p1  ;;  %p2462_p5 = scmp.eq.s32.totalorder %s2196_s14, 0 }
   0xf   : > { %2467 = sst [smem:[#allocation16_spill]] %s2209_s19  ;;  %p1919_p6 = scmp.lt.s32.totalorder %s2072_s29, 2 }
  0x10   : > { %p2215_p7 = por %p2462_p5, %p55_p3  ;;  %s485_s20 = sand.u32 1, %s2068_s28  }
  0x11   : > { %s1749_s21 = sshll.u32 %s485_s20, 3  ;;  %s1750_s22 = sshll.u32 %s2072_s29, 7 }
  0x12   : > { %s2469_s25 = sld [smem:[#allocation17_spill]]  ;;  %s489_s26 = scalar_lea.vmem [#allocation5], %s1749_s21 }
  0x13   : > { %s496_s18 = sshll.u32 %s489_s26, 4  ;;  %p2228_p8 = pnand %p1919_p6, %p51_p4  ;;  %s2226_s18 = int_to_ptr.vmem [resolvable:$true] %s496_s18 }
  0x14   : > { %s486_s28 = scalar_lea.sflag [#allocation6], %s485_s20 }
  0x15   : > { %p1978_p12 = pneg %p2228_p8 }
  0x18   : > { %s2224_s30 = scalar_lea.hbm %s2469_s25, %s1750_s22  ;;  %s1981_s24 = scalar_lea.hbm %s2469_s25, 256 }
  0x19   : > { %s1976_s23 = scalar_lea.hbm %s2224_s30, 128  ;;  %p1982_p1 = scmp.lt.u32.totalorder %s2224_s30, %s2469_s25 }
  0x1a   : > { %p1977_p11 = scmp.ne.s32.totalorder %s2224_s30, %s1976_s23  ;;  %p1983_p2 = scmp.lt.u32.totalorder %s1981_s24, %s1976_s23 }
  0x1b   : > { %p1985_p4 = scmp.lt.u32.totalorder %s1976_s23, %s2224_s30 }
  0x1c   : > { %p1979_p13 = pnand %p1978_p12, %p1977_p11  ;;  %p1984_p3 = por %p1983_p2, %p1982_p1 }
  0x1e   : > { %p1980_p0 = pneg %p1979_p13  ;;  %p1986_p6 = por %p1985_p4, %p1984_p3 }
  0x20   : > { %p1987_p5 = pnand %p1986_p6, %p1980_p0 }
  0x22   : > { %1990 = shalt.err (!%p1987_p5)
}
  0x23   : > { %s1991_s20 = scalar_lea.vmem %s2226_s18, 128  ;;  %s2074_s21 = smov [#allocation5]  }
  0x24   : > { %p1992_p11 = scmp.ne.s32.totalorder %s2226_s18, %s1991_s20  ;;  %s1996_s22 = sshll.u32 %s2074_s21, 4  ;;  %s1997_s22 = int_to_ptr.vmem [resolvable:$false] %s1996_s22 }
  0x25   : > { %s1998_s0 = scalar_lea.vmem %s1997_s22, 256  ;;  %p1999_p10 = scmp.lt.s32.totalorder %s2226_s18, %s1997_s22 }
  0x26   : > { %p1994_p13 = pnand %p1992_p11, %p1978_p12  ;;  %p2000_p1 = scmp.lt.s32.totalorder %s1998_s0, %s1991_s20 }
  0x28   : > { %p1995_p9 = pneg %p1994_p13  ;;  %p2001_p2 = por %p2000_p1, %p1999_p10 }
  0x2a   : > { %p2002_p3 = pnand %p2001_p2, %p1995_p9 }
  0x2c   : > { %2005 = shalt.err (!%p2002_p3)
}
  0x2d   : > { %1918 = dma.hbm_to_vmem [thread:$0]  (!%p2228_p8), %s2224_s30, 128, %s2226_s18, %s486_s28  }
  0x2e   : > { %p2471_p5 = scmp.lt.s32.totalorder %s2072_s29, 3  ;;  %p2472_p0 = scmp.ge.s32.totalorder %s2072_s29, 1 }
  0x30   : > { %p509_p12 = pnand %p2472_p0, %p2471_p5 }
  0x31   : > { %s514_s23 = sand.u32 (!%p509_p12), 1, %s2064_s27  }
  0x32   : > { %512 = sbr.rel (%p509_p12) target bundleno = 2793 (0xae9), region = 80  ;;  %s1752_s24 = sshll.u32 (!%p509_p12), %s514_s23, 3 }
  0x33   : > { %s515_s26 = scalar_lea.sflag (!%p509_p12), [#allocation6], %s514_s23  ;;  %s518_s20 = scalar_lea.vmem (!%p509_p12), [#allocation5], %s1752_s24 }
  0x39   : > { %2047 = dma.done.wait (%p2215_p7), %s515_s26, 128  }
  0x3a   : > { %2049 = vsyncadd (%p2215_p7), %s515_s26, 4294967168  ;;  %p572_p9 = scmp.lt.s32.totalorder %s2196_s14, 1  ;;  %v592_v1 = vlaneseq  ;;  %v2075_v2 = vmov 0.0   ;;  %vm2076_vm0 = vmmov 0   ;;  %vm610_vm2 = vcmask 1043456   ;;  %s2473_s18 = sld [smem:[#allocation18_spill]] }
  0x3b   : > { %1820 = vmatprep.subr.mxu0 %v2075_v2  ;;  %1822 = vmatprep.mubr.msk.f32.mxu0 %vm2076_vm0, %v2075_v2  ;;  %vm606_vm3 = vcmask 31744   ;;  %v605_v6 = vld [vmem:[%s2443_s3] sm:$0xf]  ;;  %v2288_v8 = vld [vmem:[%s518_s20] sm:$0xff]  ;;  %vm600_vm4 = vcmask 64512   ;;  %v2077_v19 = vmov 0.0|0.0  }
  0x3c   : > { %s2273_s28 = scalar_select %p572_p9, %s2196_s14, 1  ;;  %v593_v3 = vshrl.u32 %v592_v1, 7  ;;  %v595_v4 = vand.u32 127, %v592_v1  ;;  %1825 = vmatprep.subr.mxu1 %v2075_v2  ;;  %1827 = vmatprep.mubr.msk.f32.mxu1 %vm2076_vm0, %v2075_v2  ;;  %v768_v16 = vld [vmem:[%s2445_s5] sm:$0xff]  ;;  %v769_v17 = vld [vmem:[%s2445_s5 + $0x8] sm:$0xff]  ;;  %vm770_vm5 = vcmask 130048  }
  0x3d   : > { %1821 = vmatpush3.msk.msra.mxu0 %vm610_vm2, %v605_v6  ;;  %v1884_v18 = vpack.c.bf16 %v769_v17, %v768_v16  ;;  %v1760_v21 = vld [vmem:[%s2444_s4] ss:$0 sm:$0xff]  ;;  %v925_v30 = vld [vmem:[%s2447_s7 + $0x8] sm:$0xff]  ;;  %vm1088_vm6 = vcmask 15360   ;;  %vm1382_vm7 = vcmask 123904   ;;  %vm1402_vm8 = vcmask 122880  }
  0x3e   : > { %s1753_s19 = sshll.u32 %s2273_s28, 3  ;;  %vm596_vm1 = vcmp.eq.s32.totalorder %v593_v3, %v595_v4  ;;  %1883 = vmatprep.subr.bf16.mxu0 %v2077_v19  ;;  %v924_v29 = vld [vmem:[%s2447_s7] sm:$0xff]  ;;  %vm1395_vm9 = vcmask 1040384   ;;  %vm1397_vm10 = vcmask 1041408   ;;  %vm1399_vm11 = vcmask 124928   ;;  %p2474_p7 = scmp.eq.s32.totalorder %s2196_s14, 0 }
  0x3f   : > { %v2283_v5 = vsel %vm596_vm1, 1.0, %v2075_v2  ;;  %v1887_v31 = vpack.c.bf16 %v925_v30, %v924_v29  ;;  %v1763_v33 = vld [vmem:[%s2446_s6] ss:$0 sm:$0xff]  ;;  %vm1349_vm12 = vcmask 9216   ;;  %vm1363_vm13 = vcmask 1024   ;;  %p1776_p4 = scmp.ne.s32.totalorder %s2196_s14, 1 }
  0x40   : > { %s575_s21 = scalar_lea.vmem %s2473_s18, %s1753_s19  ;;  %v599_v9 = vadd.f32 %v2283_v5, %v2288_v8  ;;  %v1007_v37 = vld [vmem:[%s2449_s9] sm:$0xff]  ;;  %s1787_s18 = scalar_lea.vmem [#allocation2], %s2072_s29  ;;  %vm2080_vm14 = vmmov (!%p1776_p4), 0  }
  0x41   : > { %v581_v7 = vld [vmem:[%s575_s21] sm:$0xff]  ;;  %s1754_s21 = sshll.u32 %s2273_s28, 2  ;;  %s2078_s29 = smov 0.0  }
  0x42   : > { %1823 = vmatmul.mubr.msk.f32.vlgmr.msra.gmra.mrb[0].mxu0 %vm606_vm3, %v581_v7  ;;  %v601_v10 = vsel %vm600_vm4, %v599_v9, 0.0  ;;  %v1764_v38 = vld [vmem:[%s2448_s8] ss:$0 sm:$0xff]  ;;  %s579_s23 = scalar_lea.vmem %s2455_s15, %s1754_s21  ;;  %1904 = sst [smem:[#allocation3]] (%p2474_p7), %s2078_s29 }
  0x43   : > { %1834 = vmatprep.mubr.msk.f32.mxu0 %vm2076_vm0, %v2075_v2  ;;  %602 = vadd.xlane.f32.xlu0 %v601_v10  ;;  %v1766_v43 = vld [vmem:[%s2450_s10] ss:$0 sm:$0xff]  ;;  %p2475_p8 = pmov %p2474_p7  ;;  %p2476_p10 = pmov %p2474_p7 }
  0x44   : > { %1885 = vmatpush3.bf16.msra.mxu0 %v1884_v18  ;;  %s1360_s28 = sld [smem:[#allocation3]]  ;;  %v1413_v30 = vld [vmem:[%s2451_s11] sm:$0xff] (!%p1776_p4) }
  0x45   : > { %1886 = vmatprep.subr.bf16.mxu0 %v2077_v19  ;;  %1905 = sst [smem:[#allocation8]] (%p2475_p8), %s2078_s29 }
  0x46   : > { %1906 = sst [smem:[#allocation9]] (%p2476_p10), %s2078_s29 }
  0xd0   : > { %v603_v11 = vpop.xlane.xlu0 %602 }
  0xd1   : > { %1966 = vrsqrt.f32 %v603_v11 }
  0xdb   : > { %v1967_v12 = vpop.eup %1966 }
 0x115   : > { %v680_v13 = vpop.f32.mrb[0].mxu0 }
 0x116   : > { %v684_v14 = vmul.f32 %v1967_v12, %v680_v13  ;;  %v1824_v15 = vpop.f32.mrb[1].mxu0 }
 0x118   : > { %1826 = vmatpush3.msra.mxu1 %v684_v14 }
 0x119   : > { %1828 = vmatmul.mubr.msk.f32.vlgmr.msra.gmra.mrb[0].mxu1 %vm600_vm4, %v599_v9  ;;  %1837 = vmatprep.subr.mxu1 %v2075_v2 }
 0x11a   : > { %1839 = vmatprep.mubr.msk.f32.mxu1 %vm2076_vm0, %v2075_v2 }
 0x1ec   : > { %v754_v20 = vpop.f32.mrb[0].mxu1 }
 0x1ed   : > { %v758_v22 = vmul.f32 %v1967_v12, %v754_v20  ;;  %v1829_v23 = vpop.f32.mrb[1].mxu1 }
 0x1ef   : > { %v766_v24 = vadd.f32 %v1760_v21, %v758_v22 }
 0x1f1   : > { %v767_v25 = vmax.f32 %v766_v24, 0.0 }
 0x1f3   : > { %1835 = vmatmul.mubr.msk.f32.vlgmr.msra.gmra.mrb[2].mxu0 %vm770_vm5, %v767_v25 }
 0x1f4   : > { %1846 = vmatprep.mubr.msk.f32.mxu0 %vm2076_vm0, %v2075_v2  ;;  %1888 = vmatpush3.bf16.msra.mxu0 %v1887_v31  ;;  %v1414_v31 = vld [vmem:[%s2451_s11 + $0x8] sm:$0xff] (!%p1776_p4) }
 0x1f5   : > { %1854 = vmatprep.subr.mxu0 %v2075_v2 }
 0x2c6   : > { %v840_v26 = vpop.f32.mrb[2].mxu0 }
 0x2c7   : > { %v844_v27 = vmul.f32 %v1967_v12, %v840_v26  ;;  %v1836_v28 = vpop.f32.mrb[3].mxu0 }
 0x2c9   : > { %1838 = vmatpush3.msra.mxu1 %v844_v27 }
 0x2ca   : > { %1840 = vmatmul.mubr.msk.f32.vlgmr.msra.gmra.mrb[2].mxu1 %vm600_vm4, %v599_v9  ;;  %1849 = vmatprep.subr.mxu1 %v2075_v2 }
 0x2cb   : > { %1851 = vmatprep.mubr.msk.f32.mxu1 %vm2076_vm0, %v2075_v2  ;;  %1850 = vmatpush3.msra.mxu1 %v1007_v37  ;;  %v1497_v37 = vld [vmem:[%s2453_s13 + $0x8] sm:$0xff] (!%p1776_p4) }
 0x2cc   : > { %1859 = vmatprep.subr.mxu1 %v2075_v2 }
 0x39d   : > { %v911_v32 = vpop.f32.mrb[2].mxu1 }
 0x39e   : > { %v915_v34 = vmul.f32 %v1967_v12, %v911_v32  ;;  %v1841_v35 = vpop.f32.mrb[3].mxu1  ;;  %v2079_v32 = vmov (!%p1776_p4), 0.0|0.0  }
 0x3a0   : > { %v923_v36 = vadd.f32 %v1763_v33, %v915_v34  ;;  %v1890_v33 = vpack.c.bf16 (!%p1776_p4), %v1414_v31, %v1413_v30  ;;  %v2081_v34 = vmov (!%p1776_p4), 0.0  }
 0x3a2   : > { %1847 = vmatmul.mubr.msk.f32.vlgmr.msra.gmra.mrb[4].mxu0 %vm770_vm5, %v923_v36 }
 0x3a3   : > { %1855 = vmatpush3.msra.mxu0 %v923_v36  ;;  %1856 = vmatprep.mubr.msk.f32.mxu0 %vm2076_vm0, %v2075_v2  ;;  %v1496_v36 = vld [vmem:[%s2453_s13] sm:$0xff] (!%p1776_p4) }
 0x3a4   : > { %1864 = vmatprep.subr.mxu0 %v2075_v2 }
 0x475   : > { %v1002_v39 = vpop.f32.mrb[4].mxu0 }
 0x476   : > { %v1003_v40 = vadd.f32 %v1764_v38, %v1002_v39  ;;  %v1848_v41 = vpop.f32.mrb[5].mxu0  ;;  %v1893_v38 = vpack.c.bf16 (!%p1776_p4), %v1497_v37, %v1496_v36  ;;  %v1777_v39 = vld [vmem:[%s2452_s12] ss:$0 sm:$0xff] (!%p1776_p4) }
 0x478   : > { %1968 = vtanh.f32 %v1003_v40 }
 0x482   : > { %v1969_v42 = vpop.eup %1968 }
 0x483   : > { %1852 = vmatmul.mubr.msk.f32.vlgmr.msra.gmra.mrb[4].mxu1 %vm600_vm4, %v1969_v42 }
 0x484   : > { %1860 = vmatpush3.msra.mxu1 %v2288_v8  ;;  %1861 = vmatprep.mubr.msk.f32.mxu1 %vm2076_vm0, %v2075_v2 }
 0x485   : > { %1892 = vmatprep.subr.bf16.mxu1 (!%p1776_p4), %v2079_v32 }
 0x556   : > { %v1084_v44 = vpop.f32.mrb[4].mxu1 }
 0x557   : > { %v1085_v45 = vadd.f32 %v1766_v43, %v1084_v44  ;;  %v1853_v46 = vpop.f32.mrb[5].mxu1  ;;  %v1779_v44 = vld [vmem:[#allocation4] ss:$0 sm:$0xff] (!%p1776_p4) }
 0x559   : > { %v1089_v47 = vsel %vm1088_vm6, %v1085_v45, -inf }
 0x55a   : > { %1090 = vmax.xlane.f32.xlu0 %v1089_v47 }
 0x5e7   : > { %v1091_v48 = vpop.xlane.xlu0 %1090 }
 0x5e8   : > { %v1092_v49 = vsub.f32 %v1085_v45, %v1091_v48  ;;  %v1412_v45 = vld [vmem:[%s2442_s2] sm:$0x3] (!%p1776_p4) }
 0x5ea   : > { %v1093_v50 = vmul.f32 1.442695, %v1092_v49  ;;  %v1581_v49 = vrot.slane (!%p1776_p4), %v1412_v45, 6 }
 0x5ec   : > { %1970 = vpow2.f32 %v1093_v50 }
 0x5f6   : > { %v1971_v51 = vpop.eup %1970 }
 0x5f7   : > { %v1095_v52 = vsel %vm1088_vm6, %v1971_v51, 0.0 }
 0x5f8   : > { %1096 = vadd.xlane.f32.xlu1 %v1095_v52 }
 0x685   : > { %v1097_v53 = vpop.xlane.xlu1 %1096 }
 0x686   : > { %1972 = vrcp.f32 %v1097_v53 }
 0x690   : > { %v1973_v54 = vpop.eup %1972 }
 0x691   : > { %v1099_v55 = vmul.f32 %v1973_v54, %v1971_v51 }
 0x693   : > { %1100 = vxpose.xlu1.b32.start.end [1/1] (short) (narrow) %v1099_v55, 8 }
 0x713   : > { %v1116_v56 = vpop.trf.xlu1 }
 0x714   : > { %1857 = vmatmul.mubr.msk.f32.vlgmr.msra.gmra.mrb[6].mxu0 %vm600_vm4, %v1116_v56  ;;  %1862 = vmatmul.mubr.msk.f32.vlgmr.msra.gmra.mrb[6].mxu1 %vm600_vm4, %v1116_v56 }
 0x715   : > { %1865 = vmatpush3.msra.mxu0 %v1099_v55  ;;  %1866 = vmatprep.mubr.msk.f32.mxu0 %vm2076_vm0, %v2075_v2 }
 0x716   : > { %1889 = vmatprep.subr.bf16.mxu0 (!%p1776_p4), %v2079_v32  ;;  %1880 = vmatprep.mubr.msk.f32.mxu1 (!%p1776_p4), %vm2080_vm14, %v2081_v34 }
 0x717   : > { %1894 = vmatpush3.bf16.msra.mxu1 (!%p1776_p4), %v1893_v38 }
 0x7e7   : > { %v1201_v57 = vpop.f32.mrb[6].mxu0  ;;  %v1271_v58 = vpop.f32.mrb[6].mxu1 }
 0x7e8   : > { %v1772_v59 = vclamps-f32 %v1201_v57, 100.0  ;;  %v1383_v60 = vsel %vm1382_vm7, %v1201_v57, 0.0  ;;  %1867 = vmatmul.mubr.msk.f32.vlgmr.msra.gmra.mrb[8].mxu0 %vm600_vm4, %v1271_v58  ;;  %v1858_v61 = vpop.f32.mrb[7].mxu0  ;;  %v1863_v62 = vpop.f32.mrb[7].mxu1 }
 0x7e9   : > { %v1384_v63 = vrot.slane %v1383_v60, 4  ;;  %1873 = vmatprep.mubr.msk.f32.mxu0 (!%p1776_p4), %vm2080_vm14, %v2081_v34  ;;  %1891 = vmatpush3.bf16.msra.mxu0 (!%p1776_p4), %v1890_v33 }
 0x7ea   : > { %1793 = vst.msk [vmem:[%s1787_s18 + $0x1] sm:$0x1] %vm1402_vm8, %v1772_v59  ;;  %v1393_v7 = vrot.slane %v1772_v59, 7 }
 0x7eb   : > { %v1385_v0 = vadd.f32 %v1384_v63, %v1383_v60 }
 0x7ed   : > { %v1386_v1 = vrot.slane %v1385_v0, 2 }
 0x7ef   : > { %v1387_v3 = vadd.f32 %v1386_v1, %v1385_v0 }
 0x7f1   : > { %v1388_v4 = vrot.slane %v1387_v3, 1 }
 0x7f3   : > { %v1389_v2 = vadd.f32 %v1388_v4, %v1387_v3 }
 0x7f5   : > { %v1391_v6 = vmul.f32 0.5, %v1389_v2 }
 0x7f7   : > { %v1396_v8 = vsel %vm1395_vm9, %v1391_v6, %v1393_v7  ;;  %1789 = vst.msk [vmem:[%s1787_s18 - $0x1] sm:$0x1] %vm1402_vm8, %v1391_v6 }
 0x7f8   : > { %v1398_v9 = vsel %vm1397_vm10, %v1396_v8, %v1393_v7 }
 0x7f9   : > { %1400 = vst.msk [vmem:[%s579_s23] sm:$0x7] %vm1399_vm11, %v1398_v9 }
 0x7fe   : > { %v1411_v35 = vld [vmem:[#allocation2] sm:$0xf] (!%p1776_p4) }
 0x7ff   : > { %1874 = vmatmul.mubr.msk.f32.vlgmr.msra.gmra.mrb[0].mxu0 (!%p1776_p4), %vm770_vm5, %v1411_v35 }
 0x8bb   : > { %v1344_v10 = vpop.f32.mrb[8].mxu0 }
 0x8bc   : > { %v1348_v11 = vand.u32 2147483647, %v1344_v10  ;;  %v1868_v12 = vpop.f32.mrb[9].mxu0 }
 0x8be   : > { %v1350_v13 = vsel %vm1349_vm12, %v1348_v11, 0.0 }
 0x8bf   : > { %1351 = vadd.xlane.f32.xlu0 %v1350_v13 }
 0x8d2   : > { %v1491_v40 = vpop.f32.mrb[0].mxu0 (!%p1776_p4) }
 0x8d3   : > { %v1492_v41 = vadd.f32 (!%p1776_p4), %v1777_v39, %v1491_v40  ;;  %v1875_v42 = vpop.f32.mrb[1].mxu0 (!%p1776_p4) }
 0x8d5   : > { %v1495_v43 = vmax.f32 (!%p1776_p4), %v1492_v41, 0.0 }
 0x8d7   : > { %1881 = vmatmul.mubr.msk.f32.vlgmr.msra.gmra.mrb[0].mxu1 (!%p1776_p4), %vm770_vm5, %v1495_v43 }
 0x94c   : > { %v1352_v14 = vpop.xlane.xlu0 %1351 }
 0x94d   : > { %v1353_v15 = vmax.f32 %v1352_v14, 1e-12 }
 0x94f   : > { %1974 = vrcp.f32 %v1353_v15 }
 0x959   : > { %v1975_v16 = vpop.eup %1974 }
 0x95a   : > { %v1355_v17 = vmul.f32 %v1975_v16, %v1344_v10 }
 0x95c   : > { %v1356_v18 = vmul.f32 %v2283_v5, %v1355_v17 }
 0x95e   : > { %v1357_v19 = vsel %vm1349_vm12, %v1356_v18, 0.0 }
 0x95f   : > { %1358 = vadd.xlane.f32.xlu0 %v1357_v19 }
 0x9aa   : > { %v1574_v46 = vpop.f32.mrb[0].mxu1 (!%p1776_p4) }
 0x9ab   : > { %v1575_v47 = vadd.f32 (!%p1776_p4), %v1779_v44, %v1574_v46  ;;  %v1882_v48 = vpop.f32.mrb[1].mxu1 (!%p1776_p4) }
 0x9ad   : > { %v1578_v50 = vmax.f32 (!%p1776_p4), %v1575_v47, 0.0 }
 0x9af   : > { %v1579_v51 = vsub.f32 (!%p1776_p4), %v1578_v50, %v1412_v45  ;;  %v1583_v52 = vsub.f32 (!%p1776_p4), %v1578_v50, %v1581_v49 }
 0x9b1   : > { %v1584_v53 = vmul.f32 (!%p1776_p4), %v1579_v51, %v1579_v51  ;;  %v1598_v54 = vmul.f32 (!%p1776_p4), %v1583_v52, %v1583_v52 }
 0x9b3   : > { %v1585_v55 = vsel (!%p1776_p4), %vm1363_vm13, %v1584_v53, 0.0  ;;  %v1600_v56 = vrot.slane (!%p1776_p4), %v1598_v54, 2 }
 0x9b5   : > { %v1602_v57 = vsel (!%p1776_p4), %vm1363_vm13, %v1600_v56, 0.0 }
 0x9ec   : > { %v1359_v20 = vpop.xlane.xlu0 %1358 }
 0x9ed   : > { %v1771_v21 = vadd.f32 -1.0, %v1359_v20 }
 0x9ef   : > { %v1362_v22 = vmul.f32 %v1771_v21, %v1771_v21 }
 0x9f1   : > { %v1364_v23 = vsel %vm1363_vm13, %v1362_v22, 0.0 }
 0x9f2   : > { %1365 = vadd.xlane.f32.xlu0 %v1364_v23 }
 0x9f6   : > { %1586 = vadd.xlane.f32.xlu0 (!%p1776_p4), %v1585_v55 }
 0x9fa   : > { %1603 = vadd.xlane.f32.xlu0 (!%p1776_p4), %v1602_v57 }
 0xa7f   : > { %v1366_v24 = vpop.xlane.xlu0 %1365 }
 0xa80   : > { %v1367_v25 = vrot.slane %v1366_v24, 4 }
 0xa82   : > { %v1368_v26 = vadd.f32 %v1367_v25, %v1366_v24 }
 0xa83   : > { %v1587_v58 = vpop.xlane.xlu0 (!%p1776_p4), %1586 }
 0xa84   : > { %v1369_v5 = vrot.slane %v1368_v26, 2  ;;  %v1588_v59 = vrot.slane (!%p1776_p4), %v1587_v58, 4 }
 0xa86   : > { %v1370_v27 = vadd.f32 %v1369_v5, %v1368_v26  ;;  %v1589_v60 = vadd.f32 (!%p1776_p4), %v1588_v59, %v1587_v58 }
 0xa87   : > { %v1604_v61 = vpop.xlane.xlu0 (!%p1776_p4), %1603 }
 0xa88   : > { %v1371_v28 = vrot.slane %v1370_v27, 1  ;;  %v1590_v62 = vrot.slane (!%p1776_p4), %v1589_v60, 2  ;;  %v1605_v63 = vrot.slane (!%p1776_p4), %v1604_v61, 4 }
 0xa8a   : > { %v1372_v29 = vadd.f32 %v1371_v28, %v1370_v27  ;;  %v1606_v0 = vadd.f32 (!%p1776_p4), %v1605_v63, %v1604_v61  ;;  %v1591_v1 = vadd.f32 (!%p1776_p4), %v1590_v62, %v1589_v60 }
 0xa8c   : > { %1895 = vpush %v1372_v29  ;;  %v1607_v3 = vrot.slane (!%p1776_p4), %v1606_v0, 2  ;;  %v1592_v4 = vrot.slane (!%p1776_p4), %v1591_v1, 1 }
 0xa8e   : > { %v1608_v2 = vadd.f32 (!%p1776_p4), %v1607_v3, %v1606_v0  ;;  %v1593_v6 = vadd.f32 (!%p1776_p4), %v1592_v4, %v1591_v1 }
 0xa90   : > { %1897 = vpush (!%p1776_p4), %v1593_v6  ;;  %v1609_v7 = vrot.slane (!%p1776_p4), %v1608_v2, 1 }
 0xa92   : > { %v1610_v8 = vadd.f32 (!%p1776_p4), %v1609_v7, %v1608_v2 }
 0xa94   : > { %1899 = vpush (!%p1776_p4), %v1610_v8 }
 0xabc   : > { %1410 = sbr.rel (%p1776_p4) target bundleno = 2765 (0xacd), region = 92 }
 0xabd   : > { %s1896_s24 = spop %1895 }
 0xabe   : > { %s1376_s26 = smul.f32 0.5, %s1896_s24 }
 0xac0   : > { %s1377_s20 = sadd.f32 %s1376_s26, %s1360_s28 }
 0xac1   : > { %s1898_s1 = spop (!%p1776_p4), %1897 }
 0xac2   : > { %1379 = sst [smem:[#allocation3]] %s1377_s20  ;;  %s1597_s30 = smul.f32 (!%p1776_p4), 0.5, %s1898_s1 }
 0xac3   : > { %s1619_s20 = sld [smem:[#allocation3]] }
 0xac5   : > { %s1900_s18 = spop %1899 }
 0xac6   : > { %s1614_s21 = smul.f32 0.5, %s1900_s18 }
 0xac8   : > { %s1615_s22 = sadd.f32 %s1614_s21, %s1597_s30 }
 0xac9   : > { %s1620_s19 = smul.f32 0.5, %s1619_s20 }
 0xaca   : > { %s1616_s0 = smul.f32 0.5, %s1615_s22 }
 0xacb   : > { %1622 = sst [smem:[#allocation9]] %s1620_s19 }
 0xacc   : > { %1618 = sst [smem:[#allocation8]] %s1616_s0 }
 0xacd PF: > { %p1921_p6 = scmp.eq.s32.totalorder %s2196_s14, 1  ;;  %s2006_s28 = scalar_lea.hbm %s2456_s16, 16 }
 0xace   : > { %p2007_p11 = scmp.ne.s32.totalorder %s2456_s16, %s2006_s28  ;;  %p2012_p2 = scmp.lt.u32.totalorder %s2006_s28, %s2456_s16 }
 0xad0   : > { %p2008_p13 = pnand %p2007_p11, %p1921_p6 }
 0xad2   : > { %p2009_p1 = pneg %p2008_p13 }
 0xad4   : > { %p2014_p3 = pnand %p2012_p2, %p2009_p1 }
 0xad6   : > { %2017 = shalt.err (!%p2014_p3)
}
 0xad7   : > { %s2082_s1 = smov [#allocation8]   ;;  %s2018_s0 = scalar_lea.hbm %s2457_s17, 16 }
 0xad8   : > { %1908 = dma.smem_to_hbm (%p1921_p6), %s2082_s1, 16, %s2456_s16, [#allocation7]  }
 0xad9   : > { %p2019_p5 = scmp.ne.s32.totalorder %s2457_s17, %s2018_s0  ;;  %p2024_p9 = scmp.lt.u32.totalorder %s2018_s0, %s2457_s17 }
 0xadb   : > { %p2020_p0 = pnand %p2019_p5, %p1921_p6 }
 0xadd   : > { %p2021_p12 = pneg %p2020_p0 }
 0xadf   : > { %p2026_p7 = pnand %p2024_p9, %p2021_p12 }
 0xae1   : > { %2029 = shalt.err (!%p2026_p7)
}
 0xae2   : > { %s2083_s26 = smov [#allocation9]  }
 0xae3   : > { %1910 = dma.smem_to_hbm (%p1921_p6), %s2083_s26, 16, %s2457_s17, [#allocation10]  }
 0xae4   : > { %2051 = dma.done.wait (%p1921_p6), [#allocation7], 16  }
 0xae5   : > { %2053 = vsyncadd (%p1921_p6), [#allocation7], 4294967280 }
 0xae6   : > { %2055 = dma.done.wait (%p1921_p6), [#allocation10], 16  }
 0xae7   : > { %2057 = vsyncadd (%p1921_p6), [#allocation10], 4294967280 }
 0xae8   : > { %1656 = sfence }
 0xae9 PF: > { %s2477_s29 = sld [smem:[#allocation15_spill]]  ;;  %s2478_s1 = sld [smem:[#allocation14_spill]] }
 0xaea   : > { %s2479_s28 = sld [smem:[#allocation16_spill]]  ;;  %s2480_s26 = smov %s2064_s27 }
 0xaef   : > { %p32_p8 = scmp.ge.s32.totalorder %s2477_s29, 4   ;;  %s2481_s27 = smov %s2478_s1 }
 0xaf1   :  { %34 = sbr.rel (!%p32_p8) target bundleno = 8 (0x8), region = 156 }
 0xaf8   :  { %1669 = vsyncpa [#allocation6], 1 }
 0xaf9   :  { %1671 = vsyncpa [#allocation6 + $0x1], 1 }
 0xafa   :  { %1672 = vsyncpa [#allocation7], 1 }
 0xafb   :  { %1674 = vsyncpa [#allocation7 + $0x1], 1 }
 0xafc   :  { %1675 = vsyncpa [#allocation10], 1 }

</bundles_post_ra>
